<compile_context>
chip_gen: v6e
topology: v6e:2x2x1
jax: 0.10.0
libtpu: 0.0.40
codegen_flags: <defaults>
</compile_context>

<pallas_src>
import jax
import jax.numpy as jnp
from jax.experimental import pallas as pl
from jax.experimental.pallas import tpu as pltpu


def mlp_kernel(x_ref, y_ref, w0_ref, b0_ref, w1_ref, b1_ref, w2_ref, b2_ref, o_ref):
    x = x_ref[...]                                   # [1, tm]   batch on lanes
    y = y_ref[...]                                   # [1, tm]

    # Layer 0 (in_dim = 2): two rank-1 VPU updates, keep the MXU out of it.
    w0x = w0_ref[:, 0:1]                             # [h0, 1]
    w0y = w0_ref[:, 1:2]                             # [h0, 1]
    h = jax.nn.sigmoid(w0x * x + w0y * y + b0_ref[...])          # [h0, tm]

    # Layer 1 (h0 -> h1): MXU matmul; result stays lane-dense.
    z1 = jnp.dot(w1_ref[...], h, preferred_element_type=jnp.float32)
    h = jax.nn.sigmoid(z1 + b1_ref[...])                         # [h1, tm]

    # Layer 2 (out_dim = 1): elementwise multiply + sublane reduce instead of
    # a 1-row MXU matmul.
    out = jnp.sum(w2_ref[...] * h, axis=0, keepdims=True) + b2_ref[...]  # [1, tm]
    o_ref[...] = out.astype(o_ref.dtype)


def _choose_tm(n):
    """Largest row tile in {2048,...,128} dividing n with >= 2 grid steps."""
    cands = [2048, 1024, 512, 256, 128]
    divisors = [t for t in cands if n % t == 0]
    assert divisors, "N must be a multiple of 128"
    for t in divisors:
        if n // t >= 2:        # keep both v7x TensorCores busy
            return t
    return divisors[-1]


def mlp_forward(x, y, params, *, tm=None):
    """x: [N,1], y: [N,1], torch-layout params -> [N, 1]."""
    (W0, b0), (W1, b1), (W2, b2) = params
    n = x.shape[0]
    h0, in_dim = W0.shape
    h1 = W1.shape[0]
    out_dim = W2.shape[0]
    assert in_dim == 2 and out_dim == 1
    assert len(params) == 3, "kernel is specialized to one hidden layer"

    if tm is None:
        tm = _choose_tm(n)
    assert n % tm == 0 and tm % 128 == 0

    # Batch-on-lanes views (pure reshapes, no data movement).
    xs = x.reshape(1, n)
    ys = y.reshape(1, n)
    b0c = b0.reshape(h0, 1)
    b1c = b1.reshape(h1, 1)
    w2c = W2.reshape(h1, 1)          # column of the [1, h1] output weight
    b2c = b2.reshape(1, 1)

    row_spec = pl.BlockSpec((1, tm), lambda i: (0, i))
    full = lambda a: pl.BlockSpec(a.shape, lambda i: (0, 0))

    out = pl.pallas_call(
        mlp_kernel,
        out_shape=jax.ShapeDtypeStruct((1, n), jnp.float32),
        grid_spec=pltpu.PrefetchScalarGridSpec(
            num_scalar_prefetch=0,
            grid=(n // tm,),
            in_specs=[
                row_spec, row_spec,          # x, y row tiles
                full(W0), full(b0c),         # ln_in
                full(W1), full(b1c),         # hidden[0]
                full(w2c), full(b2c),        # ln_out
            ],
            out_specs=row_spec,
        ),
        compiler_params=pltpu.CompilerParams(
            dimension_semantics=("parallel",),
            vmem_limit_bytes=32 * 1024 * 1024,
        ),
    )(xs, ys, W0, b0c, W1, b1c, w2c, b2c)
    return out.reshape(n, 1)


def init_params(key, in_dim, h_dim, out_dim):
    """Deterministic init, torch Linear layout: W [out, in], b [out]."""
    dims = [in_dim] + list(h_dim) + [out_dim]
    params = []
    for i in range(len(dims) - 1):
        key, kw, kb = jax.random.split(key, 3)
        bound = 1.0 / jnp.sqrt(dims[i])
        W = jax.random.uniform(kw, (dims[i + 1], dims[i]), jnp.float32, -bound, bound)
        b = jax.random.uniform(kb, (dims[i + 1],), jnp.float32, -bound, bound)
        params.append((W, b))
    return params


def mlp_ref(x, y, params):
    """Pure-JAX reference for the correctness check."""
    (W0, b0), (W1, b1), (W2, b2) = params
    h = jnp.concatenate([x, y], axis=1)
    h = jax.nn.sigmoid(h @ W0.T + b0)
    h = jax.nn.sigmoid(h @ W1.T + b1)
    return h @ W2.T + b2


# TODO(synk): forward_dx / forward_dy / forward_dxx / forward_dyy are autodiff
# (vjp) helpers, not part of the forward pass; obtain them with jax.vjp around
# `mlp_ref` rather than hand-written Pallas kernels.

if __name__ == "__main__":
    key = jax.random.PRNGKey(0)
    in_dim, h_dim, out_dim = 2, [32, 32], 1
    N = 1024  # multiple of 128; tile chooser keeps >= 2 grid steps

    kp, kx, ky = jax.random.split(key, 3)
    params = init_params(kp, in_dim, h_dim, out_dim)
    x = jax.random.uniform(kx, (N, 1), jnp.float32)
    y = jax.random.uniform(ky, (N, 1), jnp.float32)

    out = mlp_forward(x, y, params)
    out = jax.block_until_ready(out)

    ref = mlp_ref(x, y, params)
    assert out.shape == (N, out_dim)
    assert jnp.allclose(out, ref, atol=2e-5, rtol=1e-4)
    print("KERNEL_OK")
</pallas_src>

<mosaic_0001>
module attributes {stable_mosaic.version = 11 : i64} {
  func.func @mlp_kernel(%arg0: i32, %arg1: memref<1x512xf32, #tpu.memory_space<vmem>>, %arg2: memref<1x512xf32, #tpu.memory_space<vmem>>, %arg3: memref<32x2xf32, #tpu.memory_space<vmem>>, %arg4: memref<32x1xf32, #tpu.memory_space<vmem>>, %arg5: memref<32x32xf32, #tpu.memory_space<vmem>>, %arg6: memref<32x1xf32, #tpu.memory_space<vmem>>, %arg7: memref<32x1xf32, #tpu.memory_space<vmem>>, %arg8: memref<1x1xf32, #tpu.memory_space<vmem>>, %arg9: memref<1x512xf32, #tpu.memory_space<vmem>>) attributes {dimension_semantics = [#tpu.dimension_semantics<parallel>], iteration_bounds = array<i64: 2>, scalar_prefetch = 0 : i64, scratch_operands = 0 : i64, tpu.core_type = #tpu.core_type<tc>, window_params = [{transform_indices = @transform_0, window_bounds = array<i64: 1, 512>}, {transform_indices = @transform_1, window_bounds = array<i64: 1, 512>}, {pipeline_mode = #tpu.pipeline_mode<synchronous>, transform_indices = @transform_2, window_bounds = array<i64: 32, 2>}, {pipeline_mode = #tpu.pipeline_mode<synchronous>, transform_indices = @transform_3, window_bounds = array<i64: 32, 1>}, {pipeline_mode = #tpu.pipeline_mode<synchronous>, transform_indices = @transform_4, window_bounds = array<i64: 32, 32>}, {pipeline_mode = #tpu.pipeline_mode<synchronous>, transform_indices = @transform_5, window_bounds = array<i64: 32, 1>}, {pipeline_mode = #tpu.pipeline_mode<synchronous>, transform_indices = @transform_6, window_bounds = array<i64: 32, 1>}, {pipeline_mode = #tpu.pipeline_mode<synchronous>, transform_indices = @transform_7, window_bounds = array<i64: 1, 1>}, {transform_indices = @transform_8, window_bounds = array<i64: 1, 512>}]} {
    %c0 = arith.constant 0 : index
    %c0_0 = arith.constant 0 : index
    %0 = vector.load %arg1[%c0, %c0_0] : memref<1x512xf32, #tpu.memory_space<vmem>>, vector<1x512xf32>
    %c0_1 = arith.constant 0 : index
    %c0_2 = arith.constant 0 : index
    %1 = vector.load %arg2[%c0_1, %c0_2] : memref<1x512xf32, #tpu.memory_space<vmem>>, vector<1x512xf32>
    %c0_3 = arith.constant 0 : index
    %c0_4 = arith.constant 0 : index
    %2 = vector.load %arg3[%c0_3, %c0_4] : memref<32x2xf32, #tpu.memory_space<vmem>>, vector<32x1xf32>
    %c0_5 = arith.constant 0 : index
    %c1 = arith.constant 1 : index
    %3 = vector.load %arg3[%c0_5, %c1] : memref<32x2xf32, #tpu.memory_space<vmem>>, vector<32x1xf32>
    %4 = vector.broadcast %2 : vector<32x1xf32> to vector<32x512xf32>
    %5 = vector.broadcast %0 : vector<1x512xf32> to vector<32x512xf32>
    %6 = arith.mulf %4, %5 : vector<32x512xf32>
    %7 = vector.broadcast %3 : vector<32x1xf32> to vector<32x512xf32>
    %8 = vector.broadcast %1 : vector<1x512xf32> to vector<32x512xf32>
    %9 = arith.mulf %7, %8 : vector<32x512xf32>
    %10 = arith.addf %6, %9 : vector<32x512xf32>
    %c0_6 = arith.constant 0 : index
    %c0_7 = arith.constant 0 : index
    %11 = vector.load %arg4[%c0_6, %c0_7] : memref<32x1xf32, #tpu.memory_space<vmem>>, vector<32x1xf32>
    %12 = vector.broadcast %11 : vector<32x1xf32> to vector<32x512xf32>
    %13 = arith.addf %10, %12 : vector<32x512xf32>
    %14 = arith.negf %13 : vector<32x512xf32>
    %15 = math.exp %14 : vector<32x512xf32>
    %cst = arith.constant 1.000000e+00 : f32
    %16 = vector.broadcast %cst : f32 to vector<32x512xf32>
    %17 = arith.addf %16, %15 : vector<32x512xf32>
    %18 = arith.divf %16, %17 : vector<32x512xf32>
    %c0_8 = arith.constant 0 : index
    %c0_9 = arith.constant 0 : index
    %19 = vector.load %arg5[%c0_8, %c0_9] : memref<32x32xf32, #tpu.memory_space<vmem>>, vector<32x32xf32>
    %cst_10 = arith.constant dense<0.000000e+00> : vector<32x512xf32>
    %20 = tpu.matmul %19, %18, %cst_10 {dimension_numbers = #tpu.dot_dimension_numbers<[1], [0], [0], [1], [0, 0, 1, 1], [], []>} : vector<32x32xf32>, vector<32x512xf32>, vector<32x512xf32> -> vector<32x512xf32>
    %c0_11 = arith.constant 0 : index
    %c0_12 = arith.constant 0 : index
    %21 = vector.load %arg6[%c0_11, %c0_12] : memref<32x1xf32, #tpu.memory_space<vmem>>, vector<32x1xf32>
    %22 = vector.broadcast %21 : vector<32x1xf32> to vector<32x512xf32>
    %23 = arith.addf %20, %22 : vector<32x512xf32>
    %24 = arith.negf %23 : vector<32x512xf32>
    %25 = math.exp %24 : vector<32x512xf32>
    %cst_13 = arith.constant 1.000000e+00 : f32
    %26 = vector.broadcast %cst_13 : f32 to vector<32x512xf32>
    %27 = arith.addf %26, %25 : vector<32x512xf32>
    %28 = arith.divf %26, %27 : vector<32x512xf32>
    %c0_14 = arith.constant 0 : index
    %c0_15 = arith.constant 0 : index
    %29 = vector.load %arg7[%c0_14, %c0_15] : memref<32x1xf32, #tpu.memory_space<vmem>>, vector<32x1xf32>
    %30 = vector.broadcast %29 : vector<32x1xf32> to vector<32x512xf32>
    %31 = arith.mulf %30, %28 : vector<32x512xf32>
    %cst_16 = arith.constant dense<0.000000e+00> : vector<512xf32>
    %32 = vector.multi_reduction <add>, %31, %cst_16 [0] : vector<32x512xf32> to vector<512xf32>
    %33 = vector.shape_cast %32 : vector<512xf32> to vector<1x512xf32>
    %c0_17 = arith.constant 0 : index
    %c0_18 = arith.constant 0 : index
    %34 = vector.load %arg8[%c0_17, %c0_18] : memref<1x1xf32, #tpu.memory_space<vmem>>, vector<1x1xf32>
    %35 = vector.broadcast %34 : vector<1x1xf32> to vector<1x512xf32>
    %36 = arith.addf %33, %35 : vector<1x512xf32>
    %c0_19 = arith.constant 0 : index
    %c0_20 = arith.constant 0 : index
    %37 = vector.load %arg9[%c0_19, %c0_20] : memref<1x512xf32, #tpu.memory_space<vmem>>, vector<1x512xf32>
    tpu.vector_store %arg9[%c0_19, %c0_20], %36 {strides = array<i32>} : memref<1x512xf32, #tpu.memory_space<vmem>>, vector<1x512xf32>,
    return
  }
  func.func @transform_0(%arg0: i32) -> (i32, i32) {
    %c0_i32 = arith.constant 0 : i32
    %c0_i32_0 = arith.constant 0 : i32
    return %c0_i32, %arg0 : i32, i32
  }
  func.func @transform_1(%arg0: i32) -> (i32, i32) {
    %c0_i32 = arith.constant 0 : i32
    %c0_i32_0 = arith.constant 0 : i32
    return %c0_i32, %arg0 : i32, i32
  }
  func.func @transform_2(%arg0: i32) -> (i32, i32) {
    %c0_i32 = arith.constant 0 : i32
    %c0_i32_0 = arith.constant 0 : i32
    %c0_i32_1 = arith.constant 0 : i32
    return %c0_i32, %c0_i32_0 : i32, i32
  }
  func.func @transform_3(%arg0: i32) -> (i32, i32) {
    %c0_i32 = arith.constant 0 : i32
    %c0_i32_0 = arith.constant 0 : i32
    %c0_i32_1 = arith.constant 0 : i32
    return %c0_i32, %c0_i32_0 : i32, i32
  }
  func.func @transform_4(%arg0: i32) -> (i32, i32) {
    %c0_i32 = arith.constant 0 : i32
    %c0_i32_0 = arith.constant 0 : i32
    %c0_i32_1 = arith.constant 0 : i32
    return %c0_i32, %c0_i32_0 : i32, i32
  }
  func.func @transform_5(%arg0: i32) -> (i32, i32) {
    %c0_i32 = arith.constant 0 : i32
    %c0_i32_0 = arith.constant 0 : i32
    %c0_i32_1 = arith.constant 0 : i32
    return %c0_i32, %c0_i32_0 : i32, i32
  }
  func.func @transform_6(%arg0: i32) -> (i32, i32) {
    %c0_i32 = arith.constant 0 : i32
    %c0_i32_0 = arith.constant 0 : i32
    %c0_i32_1 = arith.constant 0 : i32
    return %c0_i32, %c0_i32_0 : i32, i32
  }
  func.func @transform_7(%arg0: i32) -> (i32, i32) {
    %c0_i32 = arith.constant 0 : i32
    %c0_i32_0 = arith.constant 0 : i32
    %c0_i32_1 = arith.constant 0 : i32
    return %c0_i32, %c0_i32_0 : i32, i32
  }
  func.func @transform_8(%arg0: i32) -> (i32, i32) {
    %c0_i32 = arith.constant 0 : i32
    %c0_i32_0 = arith.constant 0 : i32
    return %c0_i32, %arg0 : i32, i32
  }
}

</mosaic_0001>

<bundles_post_ra>
// kernel: tpu_custom_call.1
= control target key start
LH: loop header
LB: loop body
LE: loop exit
PB: predicated region body
PF: predicated region fallthrough
CT: control target
= control target key end

     0   :  { %s1667_s0 = inlined_call_operand.vmem [shape: f32[1,1024], index: 0, kind: input, shape index: {}]   ;;  %s1668_s1 = inlined_call_operand.vmem [shape: f32[1,1024], index: 1, kind: input, shape index: {}]   ;;  %s1669_s2 = inlined_call_operand.vmem [shape: f32[32,2], index: 2, kind: input, shape index: {}]   ;;  %s1670_s3 = inlined_call_operand.vmem [shape: f32[32,1], index: 3, kind: input, shape index: {}]   ;;  %s1671_s4 = inlined_call_operand.vmem [shape: f32[32,32], index: 4, kind: input, shape index: {}]   ;;  %s1672_s5 = inlined_call_operand.vmem [shape: f32[32,1], index: 5, kind: input, shape index: {}]   ;;  %s1673_s6 = inlined_call_operand.vmem [shape: f32[32,1], index: 6, kind: input, shape index: {}]   ;;  %s1674_s7 = inlined_call_operand.<no memory space> [shape: f32[1,1], index: 7, kind: input, shape index: {}]   ;;  %s1675_s8 = inlined_call_operand.hbm [shape: f32[1,1024], index: 8, kind: output, shape index: {}]  }
   0x1   :  { %v13_v0 = vstv %s1674_s7 }
   0x2   :  { %14 = vst [vmem:[#allocation2] sm:$0x1] %v13_v0 }
   0x3   :  { %15 = vsyncpa [#allocation4], 0 }
   0x4   :  { %17 = vsyncpa [#allocation4 + $0x1], 0  ;;  %s1458_s29 = smov 0   ;;  %s1460_s30 = smov 0  }
   0x5   :  { %s1462_s9 = smov 0   ;;  %s1464_s10 = smov 0  }
   0x6 LB: > { %s1479_s7 = sadd.s32 4294967295, %s1403_s10   ;;  %s1112_s11 = sadd.s32 4294967294, %s1403_s10   ;;  %s1403_s10 = sphi %s1464_s10, %s1681_s10   ;;  %s1399_s9 = sphi %s1462_s9, %s1680_s9   ;;  %s1395_s30 = sphi %s1460_s30, %s1679_s30   ;;  %s1391_s29 = sphi %s1458_s29, %s1678_s29  }
   0x7   : > { %s1483_s12 = sadd.s32 1, %s1403_s10   ;;  %s208_s13 = sadd.s32 1, %s1399_s9 }
   0x8   : > { %s205_s14 = ssub.s32 %s1403_s10, %s1483_s12  ;;  %p218_p0 = scmp.ne.s32.totalorder %s1399_s9, %s1395_s30 }
   0x9   : > { %p206_p1 = scmp.eq.s32.totalorder %s205_s14, 0  ;;  %p219_p2 = scmp.eq.s32.totalorder %s1479_s7, 1 }
   0xa   : > { %p224_p3 = scmp.ne.s32.totalorder %s1395_s30, %s1391_s29  ;;  %p225_p4 = scmp.eq.s32.totalorder %s1112_s11, 1 }
   0xb   : > { %s1494_s15 = scalar_select %p206_p1, %s1399_s9, %s208_s13  }
   0xc   : > { %p1496_p5 = por %p219_p2, %p218_p0  ;;  %p1500_p6 = por %p225_p4, %p224_p3 }
   0xd   : > { %p1115_p7 = scmp.ge.s32.totalorder %s1403_s10, 1  ;;  %p277_p8 = scmp.lt.s32.totalorder %s1403_s10, 3 }
   0xf   : > { %p278_p9 = pnand %p1115_p7, %p277_p8 }
  0x10   : > { %s1117_s22 = sshll.u32 (!%p278_p9), %s1479_s7, 2  ;;  %s311_s23 = sand.u32 (!%p278_p9), 1, %s1395_s30  }
  0x11   : > { %281 = sbr.rel (%p278_p9) target bundleno = 495 (0x1ef), region = 52  ;;  %p315_p10 = scmp.lt.s32.totalorder (!%p278_p9), %s1117_s22, 7 }
  0x12   : > { %s1116_s24 = sshll.u32 (!%p278_p9), %s311_s23, 2  ;;  %s1033_s14 = scalar_lea.sflag (!%p278_p9), [#allocation4], %s311_s23 }
  0x13   : > { %s313_s26 = scalar_lea.vmem (!%p278_p9), [#allocation3], %s1116_s24  ;;  %s1409_s19 = smov (!%p278_p9), [#allocation3]  }
  0x14   : > { %s1047_s27 = sshll.u32 (!%p278_p9), %s313_s26, 4  ;;  %s1048_s27 = int_to_ptr.vmem [resolvable:$true] %s1047_s27 }
  0x15   : > { %s1343_s18 = scalar_lea.vmem (!%p278_p9), %s1048_s27, 64 }
  0x16   : > { %v330_v1 = vld [vmem:[%s1669_s2 + $0x18] sm:$0xff]  ;;  %v329_v2 = vld [vmem:[%s1669_s2 + $0x10] sm:$0xff]  ;;  %v1405_v3 = vmov 1   ;;  %v1406_v4 = vmov 0   ;;  %v328_v5 = vld [vmem:[%s1669_s2 + $0x8] sm:$0xff]  ;;  %v1407_v20 = vmov 0.0   ;;  %v352_v21 = vlaneseq  ;;  %p1344_p11 = scmp.ne.s32.totalorder %s1048_s27, %s1343_s18 }
  0x17   : > { %1208 = vset.pattern.permute.xlu0 %v1405_v3  ;;  %1209 = vset.pattern.permute.xlu1 %v1406_v4  ;;  %v327_v6 = vld [vmem:[%s1669_s2] sm:$0xff]  ;;  %v460_v7 = vld [vmem:[%s1670_s3 + $0x18] sm:$0xff]  ;;  %v458_v8 = vld [vmem:[%s1670_s3 + $0x8] sm:$0xff]  ;;  %s1683_s22 = smov (!%p315_p10, %s1117_s22), 7  ;;  %vm621_vm0 = vcmask 261120  }
  0x18   : > { %401 = vperm.xlu0 %1208, %v330_v1   ;;  %343 = vperm.xlu1 %1209, %v329_v2   ;;  %v597_v9 = vld [vmem:[%s1672_s5] sm:$0xff]  ;;  %v459_v10 = vld [vmem:[%s1670_s3 + $0x10] sm:$0xff]  ;;  %v598_v14 = vld [vmem:[%s1672_s5 + $0x8] sm:$0xff]  ;;  %v1558_v22 = vshrl.u32 %v352_v21, 7  ;;  %s322_s25 = scalar_lea.vmem %s1668_s1, %s1683_s22  ;;  %s317_s28 = scalar_lea.vmem %s1667_s0, %s1683_s22  ;;  %vm1029_vm1 = vcmp.lt.s32.totalorder %v352_v21, 512 }
  0x19   : > { %v599_v11 = vld [vmem:[%s1672_s5 + $0x10] sm:$0xff]  ;;  %v457_v12 = vld [vmem:[%s1670_s3] sm:$0xff]  ;;  %v600_v16 = vld [vmem:[%s1672_s5 + $0x18] sm:$0xff]  ;;  %698 = vmatprep.mubr.f32.mxu0 %v1407_v20  ;;  %787 = vmatprep.mubr.f32.mxu1 %v1407_v20  ;;  %p1345_p12 = pnand %p1344_p11, %p1496_p5 }
  0x1a   : > { %v908_v13 = vld [vmem:[%s1673_s6] sm:$0xff]  ;;  %v910_v15 = vld [vmem:[%s1673_s6 + $0x10] sm:$0xff]  ;;  %v909_v18 = vld [vmem:[%s1673_s6 + $0x8] sm:$0xff]  ;;  %v358_v25 = vsub.s32 1, %v1558_v22  ;;  %v362_v26 = vsub.s32 2, %v1558_v22  ;;  %v366_v27 = vsub.s32 3, %v1558_v22 }
  0x1b   : > { %v984_v17 = vld [vmem:[#allocation2] sm:$0x1]  ;;  %v911_v19 = vld [vmem:[%s1673_s6 + $0x18] sm:$0xff]  ;;  %v1570_v31 = vsub.s32 0, %v1558_v22  ;;  %p1346_p13 = pneg %p1345_p12 }
  0x1c   : > { %1210 = vset.pattern.permute.xlu1 %v1405_v3  ;;  %393 = vperm.xlu0 %1208, %v328_v5   ;;  %v326_v28 = vld [vmem:[%s322_s25] sm:$0xf]  ;;  %s1164_s25 = sshll.u32 %s1479_s7, 6  ;;  %s1347_s7 = sshll.u32 %s1409_s19, 4  ;;  %s1348_s7 = int_to_ptr.vmem [resolvable:$false] %s1347_s7 }
  0x1d   : > { %397 = vperm.xlu1 %1210, %v329_v2   ;;  %v325_v29 = vld [vmem:[%s317_s28] sm:$0xf]  ;;  %v1572_v33 = vrot.slane %v326_v28, %v358_v25  ;;  %v1574_v34 = vrot.slane %v326_v28, %v362_v26  ;;  %v1576_v35 = vrot.slane %v326_v28, %v366_v27  ;;  %v1579_v39 = vrot.slane %v326_v28, %v1570_v31  ;;  %s1045_s13 = scalar_lea.hbm %s1675_s8, %s1164_s25  ;;  %s1349_s20 = scalar_lea.vmem %s1348_s7, 128 }
  0x1e   : > { %v359_v36 = vrot.slane %v325_v29, %v358_v25  ;;  %v363_v37 = vrot.slane %v325_v29, %v362_v26  ;;  %v367_v38 = vrot.slane %v325_v29, %v366_v27  ;;  %v1585_v43 = vrot.slane %v325_v29, %v1570_v31  ;;  %p1350_p0 = scmp.lt.s32.totalorder %s1048_s27, %s1348_s7  ;;  %p1351_p1 = scmp.lt.s32.totalorder %s1349_s20, %s1343_s18 }
  0x20   : > { %1212 = vset.pattern.permute.xlu0 %v1406_v4  ;;  %p1352_p2 = por %p1351_p1, %p1350_p0 }
  0x21   : > { %1211 = vset.pattern.permute.xlu1 %v1406_v4  ;;  %348 = vperm.xlu0 %1212, %v330_v1  }
  0x22   : > { %338 = vperm.xlu1 %1211, %v328_v5   ;;  %p1353_p3 = pnand %p1352_p2, %p1346_p13 }
  0x25   : > { %333 = vperm.xlu0 %1212, %v327_v6  }
  0x26   : > { %478 = vperm.xlu1 %1211, %v460_v7  }
  0x29   : > { %468 = vperm.xlu0 %1212, %v458_v8  }
  0x2a   : > { %1213 = vset.pattern.permute.xlu1 %v1405_v3 }
  0x2b   : > { %389 = vperm.xlu1 %1213, %v327_v6  }
  0x2d   : > { %603 = vperm.xlu0 %1212, %v597_v9  }
  0x2f   : > { %1214 = vset.pattern.permute.xlu1 %v1406_v4 }
  0x30   : > { %473 = vperm.xlu1 %1214, %v459_v10  }
  0x31   : > { %613 = vperm.xlu0 %1212, %v599_v11  }
  0x34   : > { %463 = vperm.xlu1 %1214, %v457_v12  }
  0x35   : > { %914 = vperm.xlu0 %1212, %v908_v13  }
  0x38   : > { %608 = vperm.xlu1 %1214, %v598_v14  }
  0x39   : > { %924 = vperm.xlu0 %1212, %v910_v15  }
  0x3c   : > { %618 = vperm.xlu1 %1214, %v600_v16  }
  0x3d   : > { %987 = vperm.xlu0 %1212, %v984_v17  }
  0x40   : > { %919 = vperm.xlu1 %1214, %v909_v18  }
  0x44   : > { %929 = vperm.xlu1 %1214, %v911_v19  }
  0x93   : > { %v344_v23 = vpop.permute.xlu1 %343  ;;  %v402_v24 = vpop.permute.xlu0 %401 }
  0x94   : > { %v438_v40 = vmul.f32 %v1572_v33, %v402_v24  ;;  %v439_v41 = vmul.f32 %v1574_v34, %v402_v24  ;;  %v440_v42 = vmul.f32 %v1576_v35, %v402_v24  ;;  %v437_v48 = vmul.f32 %v1579_v39, %v402_v24 }
  0x95   : > { %v381_v62 = vmul.f32 %v359_v36, %v344_v23  ;;  %v382_v63 = vmul.f32 %v363_v37, %v344_v23  ;;  %v383_v0 = vmul.f32 %v367_v38, %v344_v23  ;;  %v380_v6 = vmul.f32 %v1585_v43, %v344_v23 }
  0x97   : > { %v394_v30 = vpop.permute.xlu0 %393 }
  0x98   : > { %v398_v32 = vpop.permute.xlu1 %397  ;;  %v430_v44 = vmul.f32 %v1572_v33, %v394_v30  ;;  %v431_v45 = vmul.f32 %v1574_v34, %v394_v30  ;;  %v432_v46 = vmul.f32 %v1576_v35, %v394_v30  ;;  %v429_v53 = vmul.f32 %v1579_v39, %v394_v30 }
  0x99   : > { %v434_v1 = vmul.f32 %v1572_v33, %v398_v32  ;;  %v435_v3 = vmul.f32 %v1574_v34, %v398_v32  ;;  %v436_v4 = vmul.f32 %v1576_v35, %v398_v32  ;;  %v433_v7 = vmul.f32 %v1579_v39, %v398_v32 }
  0x9b   : > { %v450_v24 = vadd.f32 %v434_v1, %v381_v62  ;;  %v451_v30 = vadd.f32 %v435_v3, %v382_v63 }
  0x9c   : > { %v349_v47 = vpop.permute.xlu0 %348 }
  0x9d   : > { %v385_v49 = vmul.f32 %v359_v36, %v349_v47  ;;  %v386_v50 = vmul.f32 %v363_v37, %v349_v47  ;;  %v387_v51 = vmul.f32 %v367_v38, %v349_v47  ;;  %v339_v52 = vpop.permute.xlu1 %338  ;;  %v384_v57 = vmul.f32 %v1585_v43, %v349_v47 }
  0x9e   : > { %v377_v54 = vmul.f32 %v359_v36, %v339_v52  ;;  %v378_v55 = vmul.f32 %v363_v37, %v339_v52  ;;  %v379_v56 = vmul.f32 %v367_v38, %v339_v52  ;;  %v376_v61 = vmul.f32 %v1585_v43, %v339_v52 }
  0x9f   : > { %v454_v58 = vadd.f32 %v438_v40, %v385_v49  ;;  %v455_v59 = vadd.f32 %v439_v41, %v386_v50  ;;  %v456_v60 = vadd.f32 %v440_v42, %v387_v51  ;;  %v453_v11 = vadd.f32 %v437_v48, %v384_v57 }
  0xa0   : > { %v334_v2 = vpop.permute.xlu0 %333  ;;  %v446_v12 = vadd.f32 %v430_v44, %v377_v54  ;;  %v447_v13 = vadd.f32 %v431_v45, %v378_v55  ;;  %v448_v14 = vadd.f32 %v432_v46, %v379_v56  ;;  %v445_v15 = vadd.f32 %v429_v53, %v376_v61 }
  0xa1   : > { %v479_v5 = vpop.permute.xlu1 %478  ;;  %v373_v23 = vmul.f32 %v359_v36, %v334_v2  ;;  %v374_v44 = vmul.f32 %v363_v37, %v334_v2  ;;  %v375_v45 = vmul.f32 %v367_v38, %v334_v2  ;;  %v452_v36 = vadd.f32 %v436_v4, %v383_v0 }
  0xa2   : > { %v494_v8 = vadd.f32 %v479_v5, %v454_v58  ;;  %v495_v9 = vadd.f32 %v479_v5, %v455_v59  ;;  %v496_v10 = vadd.f32 %v479_v5, %v456_v60  ;;  %v493_v32 = vadd.f32 %v479_v5, %v453_v11 }
  0xa3   : > { %v449_v50 = vadd.f32 %v433_v7, %v380_v6  ;;  %v372_v53 = vmul.f32 %v1585_v43, %v334_v2 }
  0xa4   : > { %v1132_v16 = vmul.f32 -1.442695, %v494_v8  ;;  %v1133_v17 = vmul.f32 -1.442695, %v495_v9  ;;  %v1134_v18 = vmul.f32 -1.442695, %v496_v10  ;;  %v469_v19 = vpop.permute.xlu0 %468 }
  0xa5   : > { %v486_v25 = vadd.f32 %v469_v19, %v446_v12  ;;  %v487_v26 = vadd.f32 %v469_v19, %v447_v13  ;;  %v488_v27 = vadd.f32 %v469_v19, %v448_v14  ;;  %v485_v28 = vadd.f32 %v469_v19, %v445_v15 }
  0xa6   : > { %1215 = vpow2.f32 %v1132_v16  ;;  %v390_v29 = vpop.permute.xlu1 %389  ;;  %v1131_v51 = vmul.f32 -1.442695, %v493_v32 }
  0xa7   : > { %1217 = vpow2.f32 %v1133_v17  ;;  %v1124_v40 = vmul.f32 -1.442695, %v486_v25  ;;  %v1125_v41 = vmul.f32 -1.442695, %v487_v26  ;;  %v1126_v42 = vmul.f32 -1.442695, %v488_v27 }
  0xa8   : > { %1219 = vpow2.f32 %v1134_v18  ;;  %v426_v46 = vmul.f32 %v1572_v33, %v390_v29  ;;  %v427_v47 = vmul.f32 %v1574_v34, %v390_v29  ;;  %v428_v48 = vmul.f32 %v1576_v35, %v390_v29 }
  0xa9   : > { %1221 = vpow2.f32 %v1124_v40  ;;  %v1123_v49 = vmul.f32 -1.442695, %v485_v28  ;;  %v425_v37 = vmul.f32 %v1579_v39, %v390_v29 }
  0xaa   : > { %1223 = vpow2.f32 %v1125_v41  ;;  %v442_v56 = vadd.f32 %v426_v46, %v373_v23  ;;  %v443_v57 = vadd.f32 %v427_v47, %v374_v44  ;;  %v444_v34 = vadd.f32 %v428_v48, %v375_v45 }
  0xab   : > { %1225 = vpow2.f32 %v1126_v42  ;;  %v474_v52 = vpop.permute.xlu1 %473  ;;  %v441_v61 = vadd.f32 %v425_v37, %v372_v53 }
  0xac   : > { %v490_v38 = vadd.f32 %v474_v52, %v450_v24  ;;  %v491_v54 = vadd.f32 %v474_v52, %v451_v30  ;;  %v492_v55 = vadd.f32 %v474_v52, %v452_v36  ;;  %v489_v33 = vadd.f32 %v474_v52, %v449_v50 }
  0xad   : > { %1227 = vpow2.f32 %v1123_v49 }
  0xae   : > { %v1128_v35 = vmul.f32 -1.442695, %v490_v38  ;;  %v1129_v58 = vmul.f32 -1.442695, %v491_v54  ;;  %v1130_v59 = vmul.f32 -1.442695, %v492_v55  ;;  %1229 = vpow2.f32 %v1131_v51 }
  0xaf   : > { %v464_v60 = vpop.permute.xlu1 %463  ;;  %v1127_v62 = vmul.f32 -1.442695, %v489_v33 }
  0xb0   : > { %1231 = vpow2.f32 %v1128_v35  ;;  %v482_v63 = vadd.f32 %v464_v60, %v442_v56  ;;  %v483_v43 = vadd.f32 %v464_v60, %v443_v57  ;;  %v484_v0 = vadd.f32 %v464_v60, %v444_v34 }
  0xb1   : > { %1233 = vpow2.f32 %v1129_v58  ;;  %v481_v39 = vadd.f32 %v464_v60, %v441_v61  ;;  %v593_v58 = vld [vmem:[%s1671_s4] sm:$0xff]  ;;  %v594_v60 = vld [vmem:[%s1671_s4 + $0x8] sm:$0xff]  ;;  %v595_v61 = vld [vmem:[%s1671_s4 + $0x10] sm:$0xff] }
  0xb2   : > { %1235 = vpow2.f32 %v1130_v59  ;;  %v1120_v1 = vmul.f32 -1.442695, %v482_v63  ;;  %v1121_v2 = vmul.f32 -1.442695, %v483_v43  ;;  %v1122_v3 = vmul.f32 -1.442695, %v484_v0  ;;  %v604_v63 = vpop.permute.xlu0 %603 }
  0xb3   : > { %v1216_v4 = vpop.eup %1215  ;;  %1237 = vpow2.f32 %v1127_v62  ;;  %v1119_v6 = vmul.f32 -1.442695, %v481_v39  ;;  %v596_v62 = vld [vmem:[%s1671_s4 + $0x18] sm:$0xff] }
  0xb4   : > { %v1218_v5 = vpop.eup %1217  ;;  %1239 = vpow2.f32 %v1120_v1  ;;  %v558_v14 = vadd.f32 1.0, %v1216_v4 }
  0xb5   : > { %v1220_v7 = vpop.eup %1219  ;;  %v559_v8 = vadd.f32 1.0, %v1218_v5  ;;  %1241 = vpow2.f32 %v1121_v2 }
  0xb6   : > { %v1222_v9 = vpop.eup %1221  ;;  %1243 = vpow2.f32 %v1122_v3  ;;  %v560_v17 = vadd.f32 1.0, %v1220_v7 }
  0xb7   : > { %v1224_v10 = vpop.eup %1223  ;;  %1245 = vrcp.f32 %v559_v8  ;;  %v550_v11 = vadd.f32 1.0, %v1222_v9 }
  0xb8   : > { %v1226_v12 = vpop.eup %1225  ;;  %v551_v13 = vadd.f32 1.0, %v1224_v10  ;;  %1247 = vpow2.f32 %v1119_v6  ;;  %v609_v6 = vpop.permute.xlu1 %608 }
  0xb9   : > { %v552_v15 = vadd.f32 1.0, %v1226_v12  ;;  %1249 = vrcp.f32 %v550_v11 }
  0xba   : > { %v1228_v16 = vpop.eup %1227  ;;  %1251 = vrcp.f32 %v551_v13 }
  0xbb   : > { %v1230_v18 = vpop.eup %1229  ;;  %1253 = vrcp.f32 %v552_v15  ;;  %v549_v19 = vadd.f32 1.0, %v1228_v16 }
  0xbc   : > { %1255 = vrcp.f32 %v558_v14  ;;  %v557_v24 = vadd.f32 1.0, %v1230_v18  ;;  %v614_v18 = vpop.permute.xlu0 %613 }
  0xbd   : > { %v1232_v25 = vpop.eup %1231  ;;  %1257 = vrcp.f32 %v549_v19 }
  0xbe   : > { %v1234_v26 = vpop.eup %1233  ;;  %v554_v27 = vadd.f32 1.0, %v1232_v25  ;;  %1259 = vrcp.f32 %v560_v17 }
  0xbf   : > { %v1236_v28 = vpop.eup %1235  ;;  %v555_v23 = vadd.f32 1.0, %v1234_v26  ;;  %1261 = vrcp.f32 %v557_v24 }
  0xc0   : > { %v1238_v29 = vpop.eup %1237  ;;  %v556_v30 = vadd.f32 1.0, %v1236_v28  ;;  %1263 = vrcp.f32 %v554_v27 }
  0xc1   : > { %v1240_v32 = vpop.eup %1239  ;;  %1265 = vrcp.f32 %v555_v23  ;;  %v553_v40 = vadd.f32 1.0, %v1238_v29 }
  0xc2   : > { %v1242_v41 = vpop.eup %1241  ;;  %1267 = vrcp.f32 %v556_v30  ;;  %v546_v42 = vadd.f32 1.0, %v1240_v32 }
  0xc3   : > { %v1244_v44 = vpop.eup %1243  ;;  %v547_v45 = vadd.f32 1.0, %v1242_v41  ;;  %1269 = vrcp.f32 %v553_v40 }
  0xc4   : > { %v1246_v46 = vpop.eup %1245  ;;  %v548_v47 = vadd.f32 1.0, %v1244_v44  ;;  %1271 = vrcp.f32 %v546_v42  ;;  %v619_v42 = vpop.permute.xlu1 %618 }
  0xc5   : > { %v1248_v48 = vpop.eup %1247  ;;  %1273 = vrcp.f32 %v547_v45 }
  0xc6   : > { %v1250_v49 = vpop.eup %1249  ;;  %1275 = vrcp.f32 %v548_v47  ;;  %v545_v36 = vadd.f32 1.0, %v1248_v48 }
  0xc7   : > { %v1252_v50 = vpop.eup %1251 }
  0xc8   : > { %v1254_v51 = vpop.eup %1253  ;;  %1277 = vrcp.f32 %v545_v36 }
  0xc9   : > { %v1256_v52 = vpop.eup %1255 }
  0xca   : > { %v1258_v53 = vpop.eup %1257  ;;  %658 = vmatprep.subr.mxu0 %v1256_v52 }
  0xcb   : > { %v1260_v37 = vpop.eup %1259 }
  0xcc   : > { %v1262_v38 = vpop.eup %1261  ;;  %747 = vmatprep.subr.mxu1 %v1260_v37 }
  0xcd   : > { %v1264_v54 = vpop.eup %1263  ;;  %659 = vmatpush1.msra.mxu0 %v1262_v38  ;;  %748 = vmatpush1.msra.mxu1 %v1246_v46 }
  0xce   : > { %v1266_v55 = vpop.eup %1265  ;;  %660 = vmatprep.subr.mxu0 %v1264_v54 }
  0xcf   : > { %v1268_v33 = vpop.eup %1267 }
  0xd0   : > { %v1270_v56 = vpop.eup %1269  ;;  %749 = vmatprep.subr.mxu1 %v1268_v33 }
  0xd1   : > { %v1272_v57 = vpop.eup %1271  ;;  %661 = vmatpush1.msra.mxu0 %v1270_v56  ;;  %750 = vmatpush1.msra.mxu1 %v1266_v55 }
  0xd2   : > { %v1274_v34 = vpop.eup %1273  ;;  %662 = vmatprep.subr.mxu0 %v1250_v49  ;;  %751 = vmatprep.subr.mxu1 %v1254_v51 }
  0xd3   : > { %v1276_v35 = vpop.eup %1275  ;;  %663 = vmatpush1.msra.mxu0 %v1258_v53  ;;  %752 = vmatpush1.msra.mxu1 %v1252_v50 }
  0xd4   : > { %664 = vmatprep.subr.mxu0 %v1272_v57  ;;  %753 = vmatprep.subr.mxu1 %v1276_v35 }
  0xd5   : > { %v1278_v59 = vpop.eup %1277  ;;  %754 = vmatpush1.msra.mxu1 %v1274_v34 }
  0xd6   : > { %665 = vmatpush1.msra.mxu0 %v1278_v59  ;;  %1139 = vmatmul.mubr.msk.f32.vlgmr.msra.gmra.mxu1 %vm621_vm0, %v593_v58 }
  0xd7   : > { %1135 = vmatmul.mubr.msk.f32.vlgmr.msra.gmra.mxu0 %vm621_vm0, %v593_v58  ;;  %793 = vmatprep.mubr.f32.mxu1 %v1407_v20 }
  0xd8   : > { %704 = vmatprep.mubr.f32.mxu0 %v1407_v20 }
  0xda   : > { %1140 = vmatmul.mubr.msk.f32.gmra.mxu1 %vm621_vm0, %v594_v60 }
  0xdb   : > { %1136 = vmatmul.mubr.msk.f32.gmra.mxu0 %vm621_vm0, %v594_v60  ;;  %799 = vmatprep.mubr.f32.mxu1 %v1407_v20 }
  0xdc   : > { %710 = vmatprep.mubr.f32.mxu0 %v1407_v20 }
  0xde   : > { %1141 = vmatmul.mubr.msk.f32.gmra.mxu1 %vm621_vm0, %v595_v61 }
  0xdf   : > { %1137 = vmatmul.mubr.msk.f32.gmra.mxu0 %vm621_vm0, %v595_v61  ;;  %805 = vmatprep.mubr.f32.mxu1 %v1407_v20 }
  0xe0   : > { %716 = vmatprep.mubr.f32.mxu0 %v1407_v20 }
  0xe2   : > { %1142 = vmatmul.mubr.msk.f32.gmra.mxu1 %vm621_vm0, %v596_v62 }
  0xe3   : > { %1138 = vmatmul.mubr.msk.f32.gmra.mxu0 %vm621_vm0, %v596_v62 }
 0x196   : > { %v789_v43 = vpop.f32.mrf.mxu1 }
 0x197   : > { %v700_v0 = vpop.f32.mrf.mxu0  ;;  %v790_v39 = vadd.f32 %v789_v43, %v604_v63 }
 0x198   : > { %v701_v1 = vadd.f32 %v700_v0, %v604_v63  ;;  %v791_v2 = vpop.f32.mrf.mxu1 }
 0x199   : > { %v1145_v3 = vmul.f32 -1.442695, %v790_v39  ;;  %v702_v4 = vpop.f32.mrf.mxu0  ;;  %v792_v5 = vadd.f32 %v791_v2, %v604_v63 }
 0x19a   : > { %v1143_v7 = vmul.f32 -1.442695, %v701_v1  ;;  %v703_v8 = vadd.f32 %v702_v4, %v604_v63  ;;  %v795_v9 = vpop.f32.mrf.mxu1 }
 0x19b   : > { %1279 = vpow2.f32 %v1145_v3  ;;  %v1146_v10 = vmul.f32 -1.442695, %v792_v5  ;;  %v706_v20 = vpop.f32.mrf.mxu0  ;;  %v796_v11 = vadd.f32 %v795_v9, %v609_v6 }
 0x19c   : > { %1281 = vpow2.f32 %v1143_v7  ;;  %v1144_v12 = vmul.f32 -1.442695, %v703_v8  ;;  %v707_v13 = vadd.f32 %v706_v20, %v609_v6  ;;  %v797_v14 = vpop.f32.mrf.mxu1 }
 0x19d   : > { %1283 = vpow2.f32 %v1146_v10  ;;  %v1149_v15 = vmul.f32 -1.442695, %v796_v11  ;;  %v708_v16 = vpop.f32.mrf.mxu0  ;;  %v798_v17 = vadd.f32 %v797_v14, %v609_v6 }
 0x19e   : > { %1285 = vpow2.f32 %v1144_v12  ;;  %v1147_v19 = vmul.f32 -1.442695, %v707_v13  ;;  %v709_v24 = vadd.f32 %v708_v16, %v609_v6  ;;  %v801_v25 = vpop.f32.mrf.mxu1 }
 0x19f   : > { %1287 = vpow2.f32 %v1149_v15  ;;  %v1150_v26 = vmul.f32 -1.442695, %v798_v17  ;;  %v712_v27 = vpop.f32.mrf.mxu0  ;;  %v802_v28 = vadd.f32 %v801_v25, %v614_v18 }
 0x1a0   : > { %1289 = vpow2.f32 %v1147_v19  ;;  %v1148_v23 = vmul.f32 -1.442695, %v709_v24  ;;  %v713_v29 = vadd.f32 %v712_v27, %v614_v18  ;;  %v803_v30 = vpop.f32.mrf.mxu1 }
 0x1a1   : > { %1291 = vpow2.f32 %v1150_v26  ;;  %v1153_v32 = vmul.f32 -1.442695, %v802_v28  ;;  %v714_v40 = vpop.f32.mrf.mxu0  ;;  %v804_v41 = vadd.f32 %v803_v30, %v614_v18  ;;  %v915_v26 = vpop.permute.xlu0 %914 }
 0x1a2   : > { %1293 = vpow2.f32 %v1148_v23  ;;  %v1151_v44 = vmul.f32 -1.442695, %v713_v29  ;;  %v715_v45 = vadd.f32 %v714_v40, %v614_v18  ;;  %v807_v46 = vpop.f32.mrf.mxu1  ;;  %v920_v30 = vpop.permute.xlu1 %919 }
 0x1a3   : > { %1295 = vpow2.f32 %v1153_v32  ;;  %v1154_v47 = vmul.f32 -1.442695, %v804_v41  ;;  %v718_v48 = vpop.f32.mrf.mxu0  ;;  %v808_v49 = vadd.f32 %v807_v46, %v619_v42 }
 0x1a4   : > { %1297 = vpow2.f32 %v1151_v44  ;;  %v1152_v36 = vmul.f32 -1.442695, %v715_v45  ;;  %v719_v50 = vadd.f32 %v718_v48, %v619_v42  ;;  %v809_v51 = vpop.f32.mrf.mxu1 }
 0x1a5   : > { %1299 = vpow2.f32 %v1154_v47  ;;  %v1157_v52 = vmul.f32 -1.442695, %v808_v49  ;;  %v720_v53 = vpop.f32.mrf.mxu0  ;;  %v810_v37 = vadd.f32 %v809_v51, %v619_v42 }
 0x1a6   : > { %1301 = vpow2.f32 %v1152_v36  ;;  %v1155_v38 = vmul.f32 -1.442695, %v719_v50  ;;  %v721_v54 = vadd.f32 %v720_v53, %v619_v42  ;;  %v925_v42 = vpop.permute.xlu0 %924 }
 0x1a7   : > { %1303 = vpow2.f32 %v1157_v52  ;;  %v1158_v55 = vmul.f32 -1.442695, %v810_v37 }
 0x1a8   : > { %v1280_v33 = vpop.eup %1279  ;;  %1305 = vpow2.f32 %v1155_v38  ;;  %v1156_v56 = vmul.f32 -1.442695, %v721_v54 }
 0x1a9   : > { %v1282_v57 = vpop.eup %1281  ;;  %v862_v34 = vadd.f32 1.0, %v1280_v33  ;;  %1307 = vpow2.f32 %v1158_v55  ;;  %v930_v55 = vpop.permute.xlu1 %929 }
 0x1aa   : > { %v1284_v35 = vpop.eup %1283  ;;  %v860_v58 = vadd.f32 1.0, %v1282_v57  ;;  %1309 = vpow2.f32 %v1156_v56 }
 0x1ab   : > { %v1286_v59 = vpop.eup %1285  ;;  %1311 = vrcp.f32 %v862_v34  ;;  %v863_v60 = vadd.f32 1.0, %v1284_v35 }
 0x1ac   : > { %v1288_v61 = vpop.eup %1287  ;;  %1313 = vrcp.f32 %v860_v58  ;;  %v861_v62 = vadd.f32 1.0, %v1286_v59 }
 0x1ad   : > { %v1290_v63 = vpop.eup %1289  ;;  %1315 = vrcp.f32 %v863_v60  ;;  %v866_v43 = vadd.f32 1.0, %v1288_v61 }
 0x1ae   : > { %v1292_v0 = vpop.eup %1291  ;;  %1317 = vrcp.f32 %v861_v62  ;;  %v864_v39 = vadd.f32 1.0, %v1290_v63 }
 0x1af   : > { %v1294_v1 = vpop.eup %1293  ;;  %1319 = vrcp.f32 %v866_v43  ;;  %v867_v2 = vadd.f32 1.0, %v1292_v0 }
 0x1b0   : > { %v1296_v3 = vpop.eup %1295  ;;  %1321 = vrcp.f32 %v864_v39  ;;  %v865_v4 = vadd.f32 1.0, %v1294_v1 }
 0x1b1   : > { %v1298_v5 = vpop.eup %1297  ;;  %1323 = vrcp.f32 %v867_v2  ;;  %v870_v6 = vadd.f32 1.0, %v1296_v3 }
 0x1b2   : > { %v1300_v7 = vpop.eup %1299  ;;  %1325 = vrcp.f32 %v865_v4  ;;  %v868_v8 = vadd.f32 1.0, %v1298_v5 }
 0x1b3   : > { %v1302_v9 = vpop.eup %1301  ;;  %1327 = vrcp.f32 %v870_v6  ;;  %v871_v10 = vadd.f32 1.0, %v1300_v7 }
 0x1b4   : > { %v1304_v20 = vpop.eup %1303  ;;  %1329 = vrcp.f32 %v868_v8  ;;  %v869_v11 = vadd.f32 1.0, %v1302_v9 }
 0x1b5   : > { %v1306_v12 = vpop.eup %1305  ;;  %1331 = vrcp.f32 %v871_v10  ;;  %v874_v13 = vadd.f32 1.0, %v1304_v20 }
 0x1b6   : > { %v1308_v14 = vpop.eup %1307  ;;  %1333 = vrcp.f32 %v869_v11  ;;  %v872_v15 = vadd.f32 1.0, %v1306_v12 }
 0x1b7   : > { %v1310_v16 = vpop.eup %1309  ;;  %1335 = vrcp.f32 %v874_v13  ;;  %v875_v17 = vadd.f32 1.0, %v1308_v14 }
 0x1b8   : > { %v1312_v18 = vpop.eup %1311  ;;  %1337 = vrcp.f32 %v872_v15  ;;  %v873_v19 = vadd.f32 1.0, %v1310_v16 }
 0x1b9   : > { %v1314_v24 = vpop.eup %1313  ;;  %1339 = vrcp.f32 %v875_v17  ;;  %v934_v46 = vmul.f32 %v1312_v18, %v915_v26  ;;  %v1408_v18 = vmov 1966171168  }
 0x1ba   : > { %v1316_v25 = vpop.eup %1315  ;;  %1341 = vrcp.f32 %v873_v19  ;;  %v932_v36 = vmul.f32 %v1314_v24, %v915_v26  ;;  %v1005_v19 = vunpack.c.l.s4 %v1408_v18 }
 0x1bb   : > { %v1318_v27 = vpop.eup %1317  ;;  %v935_v53 = vmul.f32 %v1316_v25, %v915_v26 }
 0x1bc   : > { %v1320_v28 = vpop.eup %1319  ;;  %v933_v33 = vmul.f32 %v1318_v27, %v915_v26 }
 0x1bd   : > { %v1322_v23 = vpop.eup %1321  ;;  %v938_v40 = vmul.f32 %v1320_v28, %v920_v30  ;;  %v988_v28 = vpop.permute.xlu0 %987 }
 0x1be   : > { %v1324_v29 = vpop.eup %1323  ;;  %v936_v44 = vmul.f32 %v1322_v23, %v920_v30 }
 0x1bf   : > { %v1326_v32 = vpop.eup %1325  ;;  %v939_v47 = vmul.f32 %v1324_v29, %v920_v30  ;;  %v966_v37 = vadd.f32 %v938_v40, %v934_v46  ;;  %v1006_v40 = vunpack.c.0.s8 %v1005_v19 }
 0x1c0   : > { %v1328_v41 = vpop.eup %1327  ;;  %v937_v50 = vmul.f32 %v1326_v32, %v920_v30  ;;  %v948_v56 = vadd.f32 %v936_v44, %v932_v36  ;;  %v993_v44 = vrot.slane %v988_v28, %v1570_v31 }
 0x1c1   : > { %v1330_v45 = vpop.eup %1329  ;;  %v942_v48 = vmul.f32 %v1328_v41, %v925_v42  ;;  %v975_v35 = vadd.f32 %v939_v47, %v935_v53 }
 0x1c2   : > { %v1332_v49 = vpop.eup %1331  ;;  %v940_v51 = vmul.f32 %v1330_v45, %v925_v42  ;;  %v957_v61 = vadd.f32 %v937_v50, %v933_v33 }
 0x1c3   : > { %v1334_v52 = vpop.eup %1333  ;;  %v943_v38 = vmul.f32 %v1332_v49, %v925_v42  ;;  %v967_v58 = vadd.f32 %v966_v37, %v942_v48  ;;  %v1009_v49 = vsub.s32 %v1006_v40, %v1558_v22 }
 0x1c4   : > { %v1336_v54 = vpop.eup %1335  ;;  %v941_v57 = vmul.f32 %v1334_v52, %v925_v42  ;;  %v949_v62 = vadd.f32 %v948_v56, %v940_v51 }
 0x1c5   : > { %v1338_v34 = vpop.eup %1337  ;;  %v946_v59 = vmul.f32 %v1336_v54, %v930_v55  ;;  %v976_v0 = vadd.f32 %v975_v35, %v943_v38 }
 0x1c6   : > { %v1340_v60 = vpop.eup %1339  ;;  %v944_v63 = vmul.f32 %v1338_v34, %v930_v55  ;;  %v958_v2 = vadd.f32 %v957_v61, %v941_v57 }
 0x1c7   : > { %v1342_v43 = vpop.eup %1341  ;;  %v968_v39 = vadd.f32 %v967_v58, %v946_v59  ;;  %v947_v1 = vmul.f32 %v1340_v60, %v930_v55 }
 0x1c8   : > { %v950_v3 = vadd.f32 %v949_v62, %v944_v63  ;;  %v945_v4 = vmul.f32 %v1342_v43, %v930_v55 }
 0x1c9   : > { %v969_v5 = vrot.slane %v968_v39, 4  ;;  %v977_v6 = vadd.f32 %v976_v0, %v947_v1 }
 0x1ca   : > { %v951_v7 = vrot.slane %v950_v3, 4  ;;  %v959_v8 = vadd.f32 %v958_v2, %v945_v4 }
 0x1cb   : > { %v978_v9 = vrot.slane %v977_v6, 4  ;;  %v970_v10 = vadd.f32 %v969_v5, %v968_v39 }
 0x1cc   : > { %v960_v20 = vrot.slane %v959_v8, 4  ;;  %v952_v11 = vadd.f32 %v951_v7, %v950_v3 }
 0x1cd   : > { %v971_v12 = vrot.slane %v970_v10, 2  ;;  %v979_v13 = vadd.f32 %v978_v9, %v977_v6 }
 0x1ce   : > { %v953_v14 = vrot.slane %v952_v11, 2  ;;  %v961_v15 = vadd.f32 %v960_v20, %v959_v8 }
 0x1cf   : > { %v972_v16 = vadd.f32 %v971_v12, %v970_v10  ;;  %v980_v17 = vrot.slane %v979_v13, 2 }
 0x1d0   : > { %v954_v24 = vadd.f32 %v953_v14, %v952_v11  ;;  %v962_v25 = vrot.slane %v961_v15, 2 }
 0x1d1   : > { %v973_v26 = vrot.slane %v972_v16, 1  ;;  %v981_v27 = vadd.f32 %v980_v17, %v979_v13 }
 0x1d2   : > { %v955_v23 = vrot.slane %v954_v24, 1  ;;  %v963_v29 = vadd.f32 %v962_v25, %v961_v15 }
 0x1d3   : > { %v974_v30 = vadd.f32 %v973_v26, %v972_v16  ;;  %v982_v32 = vrot.slane %v981_v27, 1 }
 0x1d4   : > { %v956_v41 = vadd.f32 %v955_v23, %v954_v24  ;;  %v964_v42 = vrot.slane %v963_v29, 1 }
 0x1d5   : > { %v983_v45 = vadd.f32 %v982_v32, %v981_v27  ;;  %v996_v47 = vadd.f32 %v993_v44, %v974_v30 }
 0x1d6   : > { %v965_v46 = vadd.f32 %v964_v42, %v963_v29  ;;  %v994_v36 = vadd.f32 %v993_v44, %v956_v41 }
 0x1d7   : > { %v997_v48 = vadd.f32 %v993_v44, %v983_v45 }
 0x1d8   : > { %v995_v50 = vadd.f32 %v993_v44, %v965_v46 }
 0x1d9   : > { %v1003_v51 = vcombine.low %v996_v47, %v997_v48 }
 0x1da   : > { %v1002_v52 = vcombine.low %v994_v36, %v995_v50 }
 0x1db   : > { %v1017_v53 = vrot.slane %v1003_v51, %v1009_v49 }
 0x1dc   : > { %v1010_v37 = vrot.slane %v1002_v52, %v1009_v49 }
 0x1de   : > { %v1018_v38 = vcombine.low %v1010_v37, %v1017_v53 }
 0x1e0   : > { %v1025_v31 = vrot.slane %v1018_v38, %v1009_v49 }
 0x1e2   : > { %1031 = vst.msk [vmem:[%s313_s26] sm:$0xf] %vm1029_vm1, %v1025_v31 }
 0x1e3   : > { %1356 = shalt.err (!%p1353_p3)
}
 0x1e4   : > { %s1357_s21 = scalar_lea.hbm %s1045_s13, 64  ;;  %s1361_s24 = scalar_lea.hbm %s1675_s8, 128 }
 0x1e5   : > { %p1358_p4 = scmp.ne.s32.totalorder %s1045_s13, %s1357_s21  ;;  %p1362_p9 = scmp.lt.s32.totalorder %s1045_s13, %s1675_s8 }
 0x1e6   : > { %p1363_p10 = scmp.lt.s32.totalorder %s1361_s24, %s1357_s21 }
 0x1e7   : > { %p1359_p7 = pnand %p1358_p4, %p1496_p5 }
 0x1e8   : > { %p1364_p11 = por %p1363_p10, %p1362_p9 }
 0x1e9   : > { %p1360_p8 = pneg %p1359_p7 }
 0x1eb   : > { %p1365_p12 = pnand %p1364_p11, %p1360_p8 }
 0x1ed   : > { %1368 = shalt.err (!%p1365_p12)
}
 0x1ee   : > { %1165 = dma.vmem_to_hbm [thread:$0]  (%p1496_p5), %s1048_s27, 64, %s1045_s13, %s1033_s14  }
 0x1ef PF: > { %p1171_p13 = scmp.ge.s32.totalorder %s1403_s10, 2  ;;  %s1059_s28 = sand.u32 1, %s1391_s29  }
 0x1f0   : > { %s1060_s11 = scalar_lea.sflag [#allocation4], %s1059_s28 }
 0x1f1   : > { %p1168_p0 = pnand %p1171_p13, %p1500_p6 }
 0x1f3   : > { %p1169_p1 = pneg %p1168_p0 }
 0x1f5   : > { %1386 = dma.done.wait (%p1169_p1), %s1060_s11, 64  }
 0x1f6   : > { %1388 = vsyncadd (%p1169_p1), %s1060_s11, 4294967232  ;;  %p20_p2 = scmp.ge.s32.totalorder %s1483_s12, 4   ;;  %s1678_s29 = smov %s1395_s30 }
 0x1f7   : > { %s1679_s30 = smov %s1399_s9  ;;  %s1680_s9 = smov %s1494_s15 }
 0x1f8   : > { %s1681_s10 = smov %s1483_s12  ;;  %22 = sbr.rel (!%p20_p2) target bundleno = 6 (0x6), region = 90 }
 0x1fd   :  { %1065 = vsyncpa [#allocation4], 1 }
 0x1fe   :  { %1067 = vsyncpa [#allocation4 + $0x1], 1 }

</bundles_post_ra>
